<compile_context>
chip_gen: v7x
topology: tpu7x:2x2x1
jax: 0.10.0
libtpu: 0.0.40
codegen_flags: <defaults>
</compile_context>

<pallas_src>
import functools

import jax
import jax.numpy as jnp
from jax.experimental import pallas as pl
from jax.experimental.pallas import tpu as pltpu


def _round_up(x, m):
    return ((x + m - 1) // m) * m


def _pick_pixel_tile(hw, tn_max, *, min_tiles=1):
    """Largest lane-dense (multiple-of-128) tile dividing hw, capped at tn_max.

    Optionally guarantees at least `min_tiles` pixel tiles (megacore occupancy
    on v7x when batch == 1).  Falls back to a full-extent block when hw is not
    a multiple of 128 (a full-extent block is always legal)."""
    if hw % 128 != 0:
        return hw
    tn = min(hw, max(128, tn_max))
    tn -= tn % 128
    tn = max(tn, 128)
    while hw % tn != 0:            # terminates at 128 since hw % 128 == 0
        tn -= 128
    while hw // tn < min_tiles and tn > 128:
        tn -= 128
        while hw % tn != 0:
            tn -= 128
    return tn


def _pick_sub_tile(tn, sub_max):
    """In-kernel pixel sub-chunk: a multiple of 128 dividing tn, capped at sub_max."""
    if tn % 128 != 0:
        return tn
    sub = min(tn, max(128, sub_max))
    sub -= sub % 128
    sub = max(sub, 128)
    while tn % sub != 0:
        sub -= 128
    return sub


def _vmem_limit_bytes():
    """Generation-aware scoped-VMEM limit: ~75% of physical, capped at 100 MiB.

    v7x: 64 MiB physical -> ~48 MiB; v5e/v6e: 128 MiB physical -> ~96 MiB."""
    try:
        cap = getattr(pltpu.get_tpu_info(), "vmem_capacity_bytes", None)
    except Exception:
        cap = None
    if not cap:
        cap = 64 << 20             # conservative floor (v7x physical VMEM)
    return int(min((cap * 3) // 4, 100 << 20))


def _ffn_kernel(x_ref, w1t_ref, b1_ref, w2t_ref, b2_ref, o_ref, *, sub, n_sub):
    # x_ref:   (Cin,  tn)  pixels in lanes (lane-dense)
    # w1t_ref: (Chid, Cin)   b1_ref: (Chid, 1)  (f32)
    # w2t_ref: (Cout, Chid)  b2_ref: (Cout, 1)  (f32)
    # o_ref:   (Cout, tn)
    # GELU constants are folded into w1t/b1/w2t by the wrapper, so the kernel
    # computes:  s = fc1'(x);  g = s * (1 + erf(s));  y = fc2'(g) + b2,
    # which equals fc2(GELU_exact(fc1(x))) of the original module.
    w1t = w1t_ref[...]
    w2t = w2t_ref[...]
    b1 = b1_ref[...]               # hoisted; broadcast over lanes
    b2 = b2_ref[...]

    def chunk(xs):
        s = jnp.dot(w1t, xs, preferred_element_type=jnp.float32) + b1
        g = s * (1.0 + jax.lax.erf(s))                 # exact GELU (folded consts)
        y = jnp.dot(w2t, g.astype(w2t.dtype),
                    preferred_element_type=jnp.float32) + b2
        return y.astype(o_ref.dtype)

    if n_sub == 1:
        o_ref[...] = chunk(x_ref[...])
    else:
        def body(c, carry):
            start = pl.multiple_of(c * sub, 128)
            o_ref[:, pl.ds(start, sub)] = chunk(x_ref[:, pl.ds(start, sub)])
            return carry
        jax.lax.fori_loop(0, n_sub, body, 0, unroll=n_sub <= 8)


def ffn_pallas(x_nchw, w1, b1, w2, b2, *,
               tn_max=2048, sub_max=512, mxu_dtype=jnp.bfloat16,
               out_dtype=None, x_buffers=2, single_buffer_weights=True):
    """FFN forward.  x_nchw: (B, Cin, H, W); w1: (Cin, Chid); b1: (Chid,);
    w2: (Chid, Cout); b2: (Cout,).

    mxu_dtype=bfloat16 (default) halves matmul-operand HBM/VMEM bytes on every
    TPU generation (v5e/v6e/v7x all run bf16 MXU natively); accumulation and
    the GELU stay f32.  Pass mxu_dtype=None for full-f32 numerical parity.
    out_dtype (default: input dtype) can be set to bf16 to also halve the
    output writeback stream if the consumer tolerates it."""
    B, Cin, H, W = x_nchw.shape
    Chid = w1.shape[1]
    Cout = w2.shape[1]
    HW = H * W
    compute_dtype = mxu_dtype if mxu_dtype is not None else x_nchw.dtype
    out_dtype = out_dtype if out_dtype is not None else x_nchw.dtype

    # NCHW is already pixel-minor: a pure reshape gives (B, C, H*W) with the
    # large pixel axis in lanes -- no transpose, no extra HBM pass.
    x3d = x_nchw.reshape(B, Cin, HW).astype(compute_dtype)

    # One-time (tiny) weight transposes + GELU constant folding:
    #   GELU(h) = 0.5*h*(1+erf(h/sqrt2)) = (1/sqrt2)*s*(1+erf(s)), s = h/sqrt2
    # so scale w1/b1 by 1/sqrt2 (producing s) and w2 by 1/sqrt2 (absorbing the
    # leading factor); the kernel then only computes s*(1+erf(s)).
    inv_sqrt2 = 0.7071067811865476
    w1t = (jnp.transpose(w1) * inv_sqrt2).astype(compute_dtype)    # (Chid, Cin)
    w2t = (jnp.transpose(w2) * inv_sqrt2).astype(compute_dtype)    # (Cout, Chid)
    b1f = (b1 * inv_sqrt2).reshape(Chid, 1).astype(jnp.float32)
    b2f = b2.reshape(Cout, 1).astype(jnp.float32)

    in_b = jnp.dtype(compute_dtype).itemsize
    out_b = jnp.dtype(out_dtype).itemsize

    # --- VMEM budgeting (generation-aware) --------------------------------
    vmem_limit = _vmem_limit_bytes()
    n_wbuf = 1 if single_buffer_weights else 2
    weight_bytes = n_wbuf * ((Chid * _round_up(Cin, 128)
                              + Cout * _round_up(Chid, 128)) * in_b
                             + (_round_up(Chid, 8) + _round_up(Cout, 8)) * 128 * 4)
    pix_bytes = (x_buffers * _round_up(Cin, 8) * in_b
                 + 2 * _round_up(Cout, 8) * out_b)          # per-pixel pipeline bufs

    min_pixel_tiles = 2 if B == 1 else 1                    # v7x megacore occupancy
    tn = _pick_pixel_tile(HW, tn_max, min_tiles=min_pixel_tiles)
    if HW % 128 == 0:
        budget = (vmem_limit * 17) // 20                    # keep ~15% headroom
        while tn > 128:
            sub_try = _pick_sub_tile(tn, sub_max)
            inter = (3 * _round_up(Chid, 8) + 2 * _round_up(Cout, 8)) * sub_try * 4
            if pix_bytes * tn + weight_bytes + inter <= budget:
                break
            tn = _pick_pixel_tile(HW, tn - 128, min_tiles=min_pixel_tiles)
    sub = _pick_sub_tile(tn, sub_max)
    n_sub = tn // sub
    grid = (B, HW // tn)

    cost = pl.CostEstimate(
        flops=2 * B * HW * (Cin * Chid + Chid * Cout),
        transcendentals=B * HW * Chid,
        bytes_accessed=(x3d.size * in_b + B * HW * Cout * out_b
                        + w1t.size * in_b + w2t.size * in_b
                        + b1f.size * 4 + b2f.size * 4),
    )

    # Grid-invariant operands (weights/biases): single-buffer to reclaim VMEM.
    def _const_spec(shape):
        imap = lambda b, p: (0, 0)
        if single_buffer_weights:
            try:
                return pl.BlockSpec(shape, imap, pipeline_mode=pl.Buffered(1))
            except TypeError:       # older JAX without pipeline_mode kwarg
                pass
        return pl.BlockSpec(shape, imap)

    x_kwargs = {} if x_buffers == 2 else dict(pipeline_mode=pl.Buffered(x_buffers))
    x_spec = pl.BlockSpec((None, Cin, tn), lambda b, p: (b, 0, p), **x_kwargs)
    out_spec = pl.BlockSpec((None, Cout, tn), lambda b, p: (b, 0, p))

    out3d = pl.pallas_call(
        functools.partial(_ffn_kernel, sub=sub, n_sub=n_sub),
        out_shape=jax.ShapeDtypeStruct((B, Cout, HW), out_dtype),
        grid_spec=pltpu.PrefetchScalarGridSpec(
            num_scalar_prefetch=0,
            grid=grid,
            in_specs=[
                x_spec,                        # batch squeezed; pixels lane-dense
                _const_spec((Chid, Cin)),
                _const_spec((Chid, 1)),
                _const_spec((Cout, Chid)),
                _const_spec((Cout, 1)),
            ],
            out_specs=out_spec,
        ),
        compiler_params=pltpu.CompilerParams(
            dimension_semantics=("parallel", "parallel"),
            vmem_limit_bytes=vmem_limit),
        cost_estimate=cost,
    )(x3d, w1t, b1f, w2t, b2f)

    return out3d.reshape(B, Cout, H, W)


def ffn_reference(x_nchw, w1, b1, w2, b2):
    x = jnp.transpose(x_nchw, (0, 2, 3, 1))          # NHWC
    h = jnp.einsum("bhwc,cd->bhwd", x, w1) + b1
    h = jax.nn.gelu(h, approximate=False)            # PyTorch nn.GELU() exact
    y = jnp.einsum("bhwd,de->bhwe", h, w2) + b2
    return jnp.transpose(y, (0, 3, 1, 2))


if __name__ == "__main__":
    key = jax.random.PRNGKey(0)
    B, Cin, H, W = 2, 4, 16, 16
    Chid = 32    # hidden_features
    Cout = Cin   # out_features defaults to in_features

    k_x, k_w1, k_b1, k_w2, k_b2 = jax.random.split(key, 5)
    x = jax.random.normal(k_x, (B, Cin, H, W), dtype=jnp.float32)
    # Parameters of the 1x1 convs, stored as (in, out) matmul weights.
    w1 = jax.random.normal(k_w1, (Cin, Chid), dtype=jnp.float32) * 0.1
    b1 = jax.random.normal(k_b1, (Chid,), dtype=jnp.float32) * 0.1
    w2 = jax.random.normal(k_w2, (Chid, Cout), dtype=jnp.float32) * 0.1
    b2 = jax.random.normal(k_b2, (Cout,), dtype=jnp.float32) * 0.1

    ref = ffn_reference(x, w1, b1, w2, b2)

    # 1) Full-f32 parity path (exact GELU, f32 MXU): tight tolerance.
    out_f32 = jax.jit(functools.partial(ffn_pallas, mxu_dtype=None))(x, w1, b1, w2, b2)
    jax.block_until_ready(out_f32)
    assert out_f32.shape == (B, Cout, H, W)
    assert jnp.allclose(out_f32, ref, atol=1e-5, rtol=1e-5)

    # 2) Exercise the in-kernel pixel sub-tiling (fori_loop) path explicitly.
    out_sub = jax.jit(functools.partial(ffn_pallas, mxu_dtype=None, sub_max=128))(
        x, w1, b1, w2, b2)
    jax.block_until_ready(out_sub)
    assert jnp.allclose(out_sub, ref, atol=1e-5, rtol=1e-5)

    # 3) Default performance config (bf16 MXU operands, f32 accumulation):
    #    intended precision trade-off -> looser tolerance vs the f32 reference.
    out_bf16 = jax.jit(ffn_pallas)(x, w1, b1, w2, b2)
    jax.block_until_ready(out_bf16)
    assert jnp.allclose(out_bf16, ref, atol=2e-2, rtol=2e-2)

    print("KERNEL_OK")
</pallas_src>

<mosaic_0001>
module attributes {stable_mosaic.version = 11 : i64} {
  func.func @_ffn_kernel(%arg0: i32, %arg1: i32, %arg2: memref<1x4x256xf32, #tpu.memory_space<vmem>>, %arg3: memref<32x4xf32, #tpu.memory_space<vmem>>, %arg4: memref<32x1xf32, #tpu.memory_space<vmem>>, %arg5: memref<4x32xf32, #tpu.memory_space<vmem>>, %arg6: memref<4x1xf32, #tpu.memory_space<vmem>>, %arg7: memref<1x4x256xf32, #tpu.memory_space<vmem>>) attributes {dimension_semantics = [#tpu.dimension_semantics<parallel>, #tpu.dimension_semantics<parallel>], iteration_bounds = array<i64: 2, 1>, scalar_prefetch = 0 : i64, scratch_operands = 0 : i64, tpu.core_type = #tpu.core_type<tc>, window_params = [{transform_indices = @transform_0, window_bounds = array<i64: 1, 4, 256>}, {pipeline_mode = #tpu.pipeline_mode<synchronous>, transform_indices = @transform_1, window_bounds = array<i64: 32, 4>}, {pipeline_mode = #tpu.pipeline_mode<synchronous>, transform_indices = @transform_2, window_bounds = array<i64: 32, 1>}, {pipeline_mode = #tpu.pipeline_mode<synchronous>, transform_indices = @transform_3, window_bounds = array<i64: 4, 32>}, {pipeline_mode = #tpu.pipeline_mode<synchronous>, transform_indices = @transform_4, window_bounds = array<i64: 4, 1>}, {transform_indices = @transform_5, window_bounds = array<i64: 1, 4, 256>}]} {
    %c0 = arith.constant 0 : index
    %c0_0 = arith.constant 0 : index
    %0 = vector.load %arg3[%c0, %c0_0] : memref<32x4xf32, #tpu.memory_space<vmem>>, vector<32x4xf32>
    %c0_1 = arith.constant 0 : index
    %c0_2 = arith.constant 0 : index
    %1 = vector.load %arg5[%c0_1, %c0_2] : memref<4x32xf32, #tpu.memory_space<vmem>>, vector<4x32xf32>
    %c0_3 = arith.constant 0 : index
    %c0_4 = arith.constant 0 : index
    %2 = vector.load %arg4[%c0_3, %c0_4] : memref<32x1xf32, #tpu.memory_space<vmem>>, vector<32x1xf32>
    %c0_5 = arith.constant 0 : index
    %c0_6 = arith.constant 0 : index
    %3 = vector.load %arg6[%c0_5, %c0_6] : memref<4x1xf32, #tpu.memory_space<vmem>>, vector<4x1xf32>
    %c0_7 = arith.constant 0 : index
    %c0_8 = arith.constant 0 : index
    %c0_9 = arith.constant 0 : index
    %4 = vector.load %arg2[%c0_7, %c0_8, %c0_9] : memref<1x4x256xf32, #tpu.memory_space<vmem>>, vector<1x4x256xf32>
    %5 = vector.shape_cast %4 : vector<1x4x256xf32> to vector<4x256xf32>
    %cst = arith.constant dense<0.000000e+00> : vector<32x256xf32>
    %6 = tpu.matmul %0, %5, %cst {dimension_numbers = #tpu.dot_dimension_numbers<[1], [0], [0], [1], [0, 0, 1, 1], [], []>} : vector<32x4xf32>, vector<4x256xf32>, vector<32x256xf32> -> vector<32x256xf32>
    %7 = vector.broadcast %2 : vector<32x1xf32> to vector<32x256xf32>
    %8 = arith.addf %6, %7 : vector<32x256xf32>
    %9 = math.erf %8 : vector<32x256xf32>
    %cst_10 = arith.constant 1.000000e+00 : f32
    %10 = vector.broadcast %cst_10 : f32 to vector<32x256xf32>
    %11 = arith.addf %10, %9 : vector<32x256xf32>
    %12 = arith.mulf %8, %11 : vector<32x256xf32>
    %cst_11 = arith.constant dense<0.000000e+00> : vector<4x256xf32>
    %13 = tpu.matmul %1, %12, %cst_11 {dimension_numbers = #tpu.dot_dimension_numbers<[1], [0], [0], [1], [0, 0, 1, 1], [], []>} : vector<4x32xf32>, vector<32x256xf32>, vector<4x256xf32> -> vector<4x256xf32>
    %14 = vector.broadcast %3 : vector<4x1xf32> to vector<4x256xf32>
    %15 = arith.addf %13, %14 : vector<4x256xf32>
    %c0_12 = arith.constant 0 : index
    %c0_13 = arith.constant 0 : index
    %c0_14 = arith.constant 0 : index
    %16 = vector.load %arg7[%c0_12, %c0_13, %c0_14] : memref<1x4x256xf32, #tpu.memory_space<vmem>>, vector<1x4x256xf32>
    %17 = vector.shape_cast %16 : vector<1x4x256xf32> to vector<4x256xf32>
    %18 = vector.shape_cast %15 : vector<4x256xf32> to vector<1x4x256xf32>
    tpu.vector_store %arg7[%c0_12, %c0_13, %c0_14], %18 {strides = array<i32>} : memref<1x4x256xf32, #tpu.memory_space<vmem>>, vector<1x4x256xf32>,
    return
  }
  func.func @transform_0(%arg0: i32, %arg1: i32) -> (i32, i32, i32) {
    %c0_i32 = arith.constant 0 : i32
    %c0_i32_0 = arith.constant 0 : i32
    return %arg0, %c0_i32, %arg1 : i32, i32, i32
  }
  func.func @transform_1(%arg0: i32, %arg1: i32) -> (i32, i32) {
    %c0_i32 = arith.constant 0 : i32
    %c0_i32_0 = arith.constant 0 : i32
    %c0_i32_1 = arith.constant 0 : i32
    return %c0_i32, %c0_i32_0 : i32, i32
  }
  func.func @transform_2(%arg0: i32, %arg1: i32) -> (i32, i32) {
    %c0_i32 = arith.constant 0 : i32
    %c0_i32_0 = arith.constant 0 : i32
    %c0_i32_1 = arith.constant 0 : i32
    return %c0_i32, %c0_i32_0 : i32, i32
  }
  func.func @transform_3(%arg0: i32, %arg1: i32) -> (i32, i32) {
    %c0_i32 = arith.constant 0 : i32
    %c0_i32_0 = arith.constant 0 : i32
    %c0_i32_1 = arith.constant 0 : i32
    return %c0_i32, %c0_i32_0 : i32, i32
  }
  func.func @transform_4(%arg0: i32, %arg1: i32) -> (i32, i32) {
    %c0_i32 = arith.constant 0 : i32
    %c0_i32_0 = arith.constant 0 : i32
    %c0_i32_1 = arith.constant 0 : i32
    return %c0_i32, %c0_i32_0 : i32, i32
  }
  func.func @transform_5(%arg0: i32, %arg1: i32) -> (i32, i32, i32) {
    %c0_i32 = arith.constant 0 : i32
    %c0_i32_0 = arith.constant 0 : i32
    return %arg0, %c0_i32, %arg1 : i32, i32, i32
  }
}

</mosaic_0001>

<bundles_post_ra>
// kernel: ffn_pallas.1
= control target key start
LH: loop header
LB: loop body
LE: loop exit
PB: predicated region body
PF: predicated region fallthrough
CT: control target
= control target key end

     0   :  { %s729_s18 = smov 0   ;;  %s731_s19 = smov 0   ;;  %s799_s0 = inlined_call_operand.vmem [shape: f32[2,4,256], index: 0, kind: input, shape index: {}]   ;;  %s800_s1 = inlined_call_operand.vmem [shape: f32[32,4], index: 1, kind: input, shape index: {}]   ;;  %s801_s2 = inlined_call_operand.vmem [shape: f32[32,1], index: 2, kind: input, shape index: {}]   ;;  %s802_s3 = inlined_call_operand.vmem [shape: f32[4,32], index: 3, kind: input, shape index: {}]   ;;  %s803_s4 = inlined_call_operand.vmem [shape: f32[4,1], index: 4, kind: input, shape index: {}]   ;;  %s804_s5 = inlined_call_operand.vmem [shape: f32[2,4,256], index: 5, kind: output, shape index: {}]  }
   0x1   :  { %s733_s20 = smov 0  }
   0x2 LB: > { %s27_s21 = sadd.s32 1, %s691_s19  ;;  %p604_p0 = scmp.ge.s32.totalorder %s695_s20, 1  ;;  %s695_s20 = sphi %s733_s20, %s15_s20   ;;  %s691_s19 = sphi %s731_s19, %s806_s19   ;;  %s687_s18 = sphi %s729_s18, %s805_s18  }
   0x3   : > { %p29_p1 = scmp.ge.s32.totalorder %s27_s21, 2  ;;  %p208_p2 = scmp.lt.s32.totalorder %s695_s20, 3 }
   0x5   : > { %s808_s21 = smov (%p29_p1, %s27_s21), 0  ;;  %p209_p3 = pnand %p604_p0, %p208_p2 }
   0x6   : > { %p245_p4 = scmp.lt.s32.totalorder (!%p209_p3), %s687_s18, 1  ;;  %v697_v0 = vmov (!%p209_p3), 0.0   ;;  %v269_v1 = vld [vmem:[%s801_s2] sm:$0xff] (!%p209_p3)  ;;  %v698_v2 = vmov (!%p209_p3), 0   ;;  %v271_v3 = vld [vmem:[%s801_s2 + $0x10] sm:$0xff] (!%p209_p3)  ;;  %v270_v4 = vld [vmem:[%s801_s2 + $0x8] sm:$0xff] (!%p209_p3) }
   0x7   : > { %212 = sbr.rel (%p209_p3) target bundleno = 488 (0x1e8), region = 40  ;;  %379 = vmatprep.mubr.f32.mxu0 (!%p209_p3), %v697_v0  ;;  %501 = vmatprep.mubr.f32.mxu1 (!%p209_p3), %v697_v0  ;;  %v272_v5 = vld [vmem:[%s801_s2 + $0x18] sm:$0xff] (!%p209_p3)  ;;  %vm310_vm0 = vcmask (!%p209_p3), 1043456   ;;  %v264_v8 = vld [vmem:[%s800_s1] sm:$0xff] (!%p209_p3)  ;;  %vm297_vm1 = vcmask (!%p209_p3), 31744   ;;  %v265_v10 = vld [vmem:[%s800_s1 + $0x8] sm:$0xff] (!%p209_p3) }
   0x8   : > { %654 = vset.pattern.permute.xlu0 (!%p209_p3), %v698_v2  ;;  %655 = vset.pattern.permute.xlu1 (!%p209_p3), %v698_v2  ;;  %v273_v9 = vld [vmem:[%s803_s4] sm:$0xf] (!%p209_p3)  ;;  %v266_v11 = vld [vmem:[%s800_s1 + $0x10] sm:$0xff] (!%p209_p3)  ;;  %v267_v12 = vld [vmem:[%s800_s1 + $0x18] sm:$0xff] (!%p209_p3)  ;;  %vm433_vm2 = vcmask (!%p209_p3), 261120  }
   0x9   : > { %277 = vperm.xlu0 (!%p209_p3), %654, %v269_v1   ;;  %287 = vperm.xlu1 (!%p209_p3), %655, %v271_v3   ;;  %v268_v61 = vld [vmem:[%s802_s3] sm:$0xf] (!%p209_p3) }
   0xd   : > { %282 = vperm.xlu0 (!%p209_p3), %654, %v270_v4   ;;  %292 = vperm.xlu1 (!%p209_p3), %655, %v272_v5  }
   0xe   : > { %s810_s18 = smov (!%p245_p4, %s687_s18), 1 }
   0xf   : > { %s618_s26 = sshll.u32 %s810_s18, 3 }
  0x10   : > { %s252_s8 = scalar_lea.vmem %s799_s0, %s618_s26  ;;  %s262_s28 = scalar_lea.vmem %s804_s5, %s618_s26 }
  0x11   : > { %v274_v6 = vld [vmem:[%s252_s8] sm:$0xff]  ;;  %430 = vperm.xlu0 %654, %v273_v9  }
  0x12   : > { %v296_v7 = vcombine.high %v274_v6, %v274_v6 }
  0x14   : > { %609 = vmatprep.subr.msk.mxu0 %vm310_vm0, %v296_v7 }
  0x15   : > { %610 = vmatpush1.msk.msra.mxu0 %vm310_vm0, %v274_v6 }
  0x16   : > { %611 = vmatmul.mubr.msk.f32.vlgmr.msra.gmra.mrb[0].mxu0 %vm297_vm1, %v264_v8 }
  0x17   : > { %385 = vmatprep.mubr.f32.mxu0 %v697_v0 }
  0x1a   : > { %612 = vmatmul.mubr.msk.f32.gmra.mrb[2].mxu0 %vm297_vm1, %v265_v10 }
  0x1b   : > { %391 = vmatprep.mubr.f32.mxu0 %v697_v0 }
  0x1e   : > { %613 = vmatmul.mubr.msk.f32.gmra.mrb[4].mxu0 %vm297_vm1, %v266_v11 }
  0x1f   : > { %397 = vmatprep.mubr.f32.mxu0 %v697_v0 }
  0x22   : > { %614 = vmatmul.mubr.msk.f32.gmra.mrb[6].mxu0 %vm297_vm1, %v267_v12 }
  0x88   : > { %v278_v13 = vpop.permute.xlu0 %277  ;;  %v288_v22 = vpop.permute.xlu1 %287 }
  0x8c   : > { %v283_v18 = vpop.permute.xlu0 %282  ;;  %v293_v28 = vpop.permute.xlu1 %292 }
  0x90   : > { %v431_v62 = vpop.permute.xlu0 %430 }
  0xe9   : > { %v381_v14 = vpop.f32.mrb[0].mxu0 }
  0xea   : > { %v382_v15 = vadd.f32 %v381_v14, %v278_v13  ;;  %v383_v16 = vpop.f32.mrb[1].mxu0 }
  0xeb   : > { %v384_v17 = vadd.f32 %v383_v16, %v278_v13 }
  0xec   : > { %657 = verf.f32 %v382_v15 }
  0xed   : > { %659 = verf.f32 %v384_v17  ;;  %v387_v19 = vpop.f32.mrb[2].mxu0 }
  0xee   : > { %v388_v20 = vadd.f32 %v387_v19, %v283_v18  ;;  %v389_v21 = vpop.f32.mrb[3].mxu0 }
  0xef   : > { %v390_v23 = vadd.f32 %v389_v21, %v283_v18 }
  0xf0   : > { %661 = verf.f32 %v388_v20 }
  0xf1   : > { %663 = verf.f32 %v390_v23  ;;  %v393_v24 = vpop.f32.mrb[4].mxu0 }
  0xf2   : > { %v394_v25 = vadd.f32 %v393_v24, %v288_v22  ;;  %v395_v26 = vpop.f32.mrb[5].mxu0 }
  0xf3   : > { %v396_v27 = vadd.f32 %v395_v26, %v288_v22 }
  0xf4   : > { %665 = verf.f32 %v394_v25 }
  0xf5   : > { %667 = verf.f32 %v396_v27  ;;  %v399_v29 = vpop.f32.mrb[6].mxu0 }
  0xf6   : > { %v658_v30 = vpop.eup %657  ;;  %v400_v31 = vadd.f32 %v399_v29, %v293_v28  ;;  %v401_v32 = vpop.f32.mrb[7].mxu0 }
  0xf7   : > { %v660_v33 = vpop.eup %659  ;;  %v402_v34 = vadd.f32 %v401_v32, %v293_v28  ;;  %v412_v35 = vadd.f32 1.0, %v658_v30 }
  0xf8   : > { %669 = verf.f32 %v400_v31  ;;  %v413_v37 = vadd.f32 1.0, %v660_v33 }
  0xf9   : > { %671 = verf.f32 %v402_v34  ;;  %v420_v41 = vmul.f32 %v412_v35, %v382_v15 }
  0xfa   : > { %v662_v36 = vpop.eup %661  ;;  %v421_v44 = vmul.f32 %v413_v37, %v384_v17 }
  0xfb   : > { %v664_v38 = vpop.eup %663  ;;  %v414_v39 = vadd.f32 1.0, %v662_v36 }
  0xfc   : > { %v415_v40 = vadd.f32 1.0, %v664_v38 }
  0xfd   : > { %v422_v42 = vmul.f32 %v414_v39, %v388_v20 }
  0xfe   : > { %v666_v43 = vpop.eup %665  ;;  %v423_v45 = vmul.f32 %v415_v40, %v390_v23 }
  0xff   : > { %v668_v46 = vpop.eup %667  ;;  %v622_v47 = vpack.c.bf16 %v422_v42, %v420_v41  ;;  %v416_v49 = vadd.f32 1.0, %v666_v43 }
 0x100   : > { %v620_v48 = vpack.c.bf16 %v423_v45, %v421_v44  ;;  %v417_v51 = vadd.f32 1.0, %v668_v46 }
 0x101   : > { %v424_v55 = vmul.f32 %v416_v49, %v394_v25 }
 0x102   : > { %v670_v50 = vpop.eup %669  ;;  %621 = vmatprep.subr.bf16.mxu1 %v620_v48  ;;  %v425_v57 = vmul.f32 %v417_v51, %v396_v27 }
 0x103   : > { %v672_v52 = vpop.eup %671  ;;  %v418_v53 = vadd.f32 1.0, %v670_v50  ;;  %623 = vmatpush1.bf16.msra.mxu1 %v622_v47 }
 0x104   : > { %v419_v54 = vadd.f32 1.0, %v672_v52 }
 0x105   : > { %v426_v56 = vmul.f32 %v418_v53, %v400_v31 }
 0x106   : > { %v427_v58 = vmul.f32 %v419_v54, %v402_v34 }
 0x107   : > { %v626_v59 = vpack.c.bf16 %v426_v56, %v424_v55 }
 0x108   : > { %v624_v60 = vpack.c.bf16 %v427_v58, %v425_v57 }
 0x10a   : > { %625 = vmatprep.subr.bf16.mxu1 %v624_v60 }
 0x10b   : > { %627 = vmatpush1.bf16.msra.mxu1 %v626_v59 }
 0x10e   : > { %615 = vmatmul.mubr.msk.f32.vlgmr.msra.gmra.mrb[0].mxu1 %vm433_vm2, %v268_v61 }
 0x1e1   : > { %v503_v63 = vpop.f32.mrb[0].mxu1 }
 0x1e2   : > { %v504_v0 = vadd.f32 %v503_v63, %v431_v62  ;;  %v505_v1 = vpop.f32.mrb[1].mxu1 }
 0x1e3   : > { %v506_v2 = vadd.f32 %v505_v1, %v431_v62 }
 0x1e5   : > { %v510_v3 = vcombine.low %v504_v0, %v506_v2 }
 0x1e7   : > { %512 = vst [vmem:[%s262_s28] sm:$0xff] %v510_v3 }
 0x1e8 PF: > { %s15_s20 = sadd.s32 1, %s695_s20   ;;  %s805_s18 = smov %s691_s19 }
 0x1e9   : > { %p12_p5 = scmp.ge.s32.totalorder %s15_s20, 4   ;;  %s806_s19 = smov %s808_s21 }
 0x1eb   :  { %14 = sbr.rel (!%p12_p5) target bundleno = 2 (0x2), region = 70 }

</bundles_post_ra>
